<compile_context>
chip_gen: v7x
topology: tpu7x:2x2x1
jax: 0.10.0
libtpu: 0.0.40
codegen_flags: <defaults>
</compile_context>

<pallas_src>
import functools

import jax
import jax.numpy as jnp
from jax.experimental import pallas as pl
from jax.experimental.pallas import tpu as pltpu

NEG_INF = -1.0e9


def _row_tile(m, max_tile=512):
    """Row-tile size: full extent when small, else a sublane-aligned tile."""
    return m if m <= max_tile else max_tile


# ---------------------------------------------------- fused QKV projection --
def _qkv_proj_kernel(xq_ref, xk_ref, xv_ref, wq_ref, wk_ref, wv_ref,
                     q_ref, k_ref, v_ref):
    def proj(x_ref, w_ref, o_ref):
        o_ref[...] = jnp.dot(
            x_ref[...].astype(jnp.bfloat16),   # activation cast hides under MXU
            w_ref[...],                        # weights already bf16 (pre-cast)
            preferred_element_type=jnp.float32,
        ).astype(o_ref.dtype)

    proj(xq_ref, wq_ref, q_ref)
    proj(xk_ref, wk_ref, k_ref)
    proj(xv_ref, wv_ref, v_ref)


def qkv_projection(xq, xk, xv, wq, wk, wv):
    """xq/xk/xv: (M, Dm) f32; weights (Dm, N*) bf16 (resident). Outputs bf16."""
    M, Dm = xq.shape
    Nq, Nk, Nv = wq.shape[1], wk.shape[1], wv.shape[1]
    tm = _row_tile(M)
    grid = (pl.cdiv(M, tm),)
    row = lambda i: (i, 0)
    full = lambda i: (0, 0)
    return pl.pallas_call(
        _qkv_proj_kernel,
        out_shape=(
            jax.ShapeDtypeStruct((M, Nq), jnp.bfloat16),
            jax.ShapeDtypeStruct((M, Nk), jnp.bfloat16),
            jax.ShapeDtypeStruct((M, Nv), jnp.bfloat16),
        ),
        grid=grid,
        in_specs=[
            pl.BlockSpec((tm, Dm), row),
            pl.BlockSpec((tm, Dm), row),
            pl.BlockSpec((tm, Dm), row),
            pl.BlockSpec((Dm, Nq), full),
            pl.BlockSpec((Dm, Nk), full),
            pl.BlockSpec((Dm, Nv), full),
        ],
        out_specs=(
            pl.BlockSpec((tm, Nq), row),
            pl.BlockSpec((tm, Nk), row),
            pl.BlockSpec((tm, Nv), row),
        ),
        compiler_params=pltpu.CompilerParams(dimension_semantics=("parallel",)),
    )(xq, xk, xv, wq, wk, wv)


# --------------------------------------------------------------- attention --
def _attn_step_bytes(tq, S, d_k, d_v):
    # q + k + v + bias (bf16) + context out (bf16) + attn weights out (f32)
    return (tq * d_k * 2 + S * d_k * 2 + S * d_v * 2 + tq * S * 2
            + tq * d_v * 2 + tq * S * 4)


def _attn_vmem_limit(tq, S, d_k, d_v):
    # double-buffered blocks + headroom; clamp to the smallest physical VMEM
    need = _attn_step_bytes(tq, S, d_k, d_v) * 2 * 2
    return int(max(32 << 20, min(need, 64 << 20)))


def _attention_kernel(q_ref, k_ref, v_ref, bias_ref, o_ref, a_ref, *, tq):
    # q_ref: (tq, d_k) bf16   k_ref: (S, d_k) bf16   v_ref: (S, d_v) bf16
    # bias_ref: (tq, S) bf16 additive padding bias (0 / -1e9)
    # q is already scaled by 1/temperature (folded into W_q in the wrapper).
    scores = jax.lax.dot_general(
        q_ref[...], k_ref[...], (((1,), (1,)), ((), ())),
        preferred_element_type=jnp.float32)                    # (tq, S) f32
    scores = scores + bias_ref[...].astype(jnp.float32)

    # causal mask generated in-kernel: no HBM read, VPU work hidden by the MXU
    q_start = pl.program_id(2) * tq
    row = q_start + jax.lax.broadcasted_iota(jnp.int32, scores.shape, 0)
    col = jax.lax.broadcasted_iota(jnp.int32, scores.shape, 1)
    scores = jnp.where(col > row, NEG_INF, scores)

    # softmax in f32; exact reciprocal since a_ref is part of the returned API
    m = jnp.max(scores, axis=-1, keepdims=True)
    e = jnp.exp(scores - m)
    p = e * pl.reciprocal(jnp.sum(e, axis=-1, keepdims=True))
    a_ref[...] = p.astype(a_ref.dtype)

    o_ref[...] = jnp.dot(p.astype(jnp.bfloat16), v_ref[...],
                         preferred_element_type=jnp.float32).astype(o_ref.dtype)


def fused_attention(q, k, v, bias):
    """q/k: (B,H,S,d_k) bf16  v: (B,H,S,d_v) bf16  bias: (B,S,S) bf16.

    Returns (context (B,H,S,d_v) bf16, attn weights (B,H,S,S) f32).
    """
    B, H, S, d_k = q.shape
    d_v = v.shape[-1]

    # Query-row tile: keep per-step VMEM (dominated by the (tq,S) f32 attn
    # block) small enough that double-buffered blocks fit v7x's 64 MiB.
    tq = min(S, 256)
    while tq > 8 and _attn_step_bytes(tq, S, d_k, d_v) > (16 << 20):
        tq //= 2

    kernel = functools.partial(_attention_kernel, tq=tq)
    grid = (B, H, pl.cdiv(S, tq))
    out, attn = pl.pallas_call(
        kernel,
        out_shape=(
            jax.ShapeDtypeStruct((B, H, S, d_v), jnp.bfloat16),
            jax.ShapeDtypeStruct((B, H, S, S), jnp.float32),
        ),
        grid=grid,
        in_specs=[
            pl.BlockSpec((None, None, tq, d_k), lambda b, h, i: (b, h, i, 0)),
            # K/V index maps are constant along the query-tile axis -> no re-DMA
            pl.BlockSpec((None, None, S, d_k), lambda b, h, i: (b, h, 0, 0)),
            pl.BlockSpec((None, None, S, d_v), lambda b, h, i: (b, h, 0, 0)),
            pl.BlockSpec((None, tq, S), lambda b, h, i: (b, i, 0)),
        ],
        out_specs=(
            pl.BlockSpec((None, None, tq, d_v), lambda b, h, i: (b, h, i, 0)),
            pl.BlockSpec((None, None, tq, S), lambda b, h, i: (b, h, i, 0)),
        ),
        compiler_params=pltpu.CompilerParams(
            dimension_semantics=("parallel", "parallel", "parallel"),
            vmem_limit_bytes=_attn_vmem_limit(tq, S, d_k, d_v)),
    )(q, k, v, bias)
    return out, attn


# -------------------------------------------- fc + residual + layernorm -----
def _fc_res_ln_kernel(x_ref, w_ref, res_ref, g_ref, b_ref, o_ref, *, eps):
    # x_ref (tm, H*d_v) bf16 ; w_ref (H*d_v, Dm) bf16 ; res_ref (tm, Dm) f32
    y = jnp.dot(x_ref[...], w_ref[...], preferred_element_type=jnp.float32)
    y = y + res_ref[...]                         # dropout is identity (eval)
    mean = jnp.mean(y, axis=-1, keepdims=True)
    var = jnp.mean(jnp.square(y - mean), axis=-1, keepdims=True)
    ynorm = (y - mean) * jax.lax.rsqrt(var + eps)
    o_ref[...] = (ynorm * g_ref[...] + b_ref[...]).astype(o_ref.dtype)


def fc_residual_layernorm(x, w, res, gamma, beta, *, eps=1e-6):
    """x: (M, H*d_v) bf16  w: (H*d_v, Dm) bf16  res: (M, Dm) f32."""
    M, Dv = x.shape
    Dm = w.shape[1]
    tm = _row_tile(M)
    grid = (pl.cdiv(M, tm),)
    return pl.pallas_call(
        functools.partial(_fc_res_ln_kernel, eps=eps),
        out_shape=jax.ShapeDtypeStruct((M, Dm), jnp.float32),
        grid=grid,
        in_specs=[
            pl.BlockSpec((tm, Dv), lambda i: (i, 0)),
            pl.BlockSpec((Dv, Dm), lambda i: (0, 0)),
            pl.BlockSpec((tm, Dm), lambda i: (i, 0)),
            pl.BlockSpec((1, Dm), lambda i: (0, 0)),
            pl.BlockSpec((1, Dm), lambda i: (0, 0)),
        ],
        out_specs=pl.BlockSpec((tm, Dm), lambda i: (i, 0)),
        compiler_params=pltpu.CompilerParams(dimension_semantics=("parallel",)),
    )(x, w, res, gamma.reshape(1, Dm), beta.reshape(1, Dm))


# ---------------------------------------------------------------- wrapper ---
def build_padding_bias(attn_mask, B, S):
    """Additive padding bias (0 / -1e9) in bf16; causal mask is done in-kernel."""
    if attn_mask is None:
        return jnp.zeros((B, S, S), jnp.bfloat16)
    masked = jnp.broadcast_to(attn_mask == 0, (B, S, S))
    return jnp.where(masked, NEG_INF, 0.0).astype(jnp.bfloat16)


def init_mha_params(key, n_heads, d_model, d_k, d_v):
    k1, k2, k3, k4 = jax.random.split(key, 4)

    def lin(k, fan_in, fan_out):
        bound = 1.0 / (fan_in ** 0.5)
        return jax.random.uniform(k, (fan_in, fan_out), jnp.float32, -bound, bound)

    return {
        "w_qs": lin(k1, d_model, n_heads * d_k),
        "w_ks": lin(k2, d_model, n_heads * d_k),
        "w_vs": lin(k3, d_model, n_heads * d_v),
        "fc": lin(k4, n_heads * d_v, d_model),
        "ln_gamma": jnp.ones((d_model,), jnp.float32),
        "ln_beta": jnp.zeros((d_model,), jnp.float32),
    }


def multi_head_attention(params, q, k, v, attn_mask=None, *, n_heads, d_k, d_v):
    B, S, Dm = q.shape
    M = B * S
    residual = q
    temperature = float(d_k) ** 0.5

    # Weights cast to bf16 once; 1/temperature folded into W_q (algebraically
    # identical to scaling q).
    wq = (params["w_qs"] * (1.0 / temperature)).astype(jnp.bfloat16)
    wk = params["w_ks"].astype(jnp.bfloat16)
    wv = params["w_vs"].astype(jnp.bfloat16)
    wo = params["fc"].astype(jnp.bfloat16)

    # Fused, row-tiled Q/K/V projections -> bf16 intermediates.
    q_p, k_p, v_p = qkv_projection(
        q.reshape(M, Dm), k.reshape(M, Dm), v.reshape(M, Dm), wq, wk, wv)

    # (B,S,H,d) -> (B,H,S,d): one cheap bf16 transpose in XLA so each grid step
    # of the attention kernel is one clean per-head matmul pair.
    def to_bhsd(x, d):
        return x.reshape(B, S, n_heads, d).transpose(0, 2, 1, 3)

    bias = build_padding_bias(attn_mask, B, S)
    ctx, attn_w = fused_attention(
        to_bhsd(q_p, d_k), to_bhsd(k_p, d_k), to_bhsd(v_p, d_v), bias)

    # (B,H,S,d_v) -> (M, H*d_v) bf16, then fused fc + residual + LayerNorm.
    ctx = ctx.transpose(0, 2, 1, 3).reshape(M, n_heads * d_v)
    y = fc_residual_layernorm(ctx, wo, residual.reshape(M, Dm),
                              params["ln_gamma"], params["ln_beta"], eps=1e-6)
    return y.reshape(B, S, Dm), attn_w


# --------------------------------------------------------------- reference --
def _reference(params, q, k, v, attn_mask, n_heads, d_k, d_v):
    B, S, Dm = q.shape
    temp = float(d_k) ** 0.5
    qp = (q.reshape(B * S, Dm) @ params["w_qs"]).reshape(B, S, n_heads, d_k)
    kp = (k.reshape(B * S, Dm) @ params["w_ks"]).reshape(B, S, n_heads, d_k)
    vp = (v.reshape(B * S, Dm) @ params["w_vs"]).reshape(B, S, n_heads, d_v)
    qp, kp, vp = (x.transpose(0, 2, 1, 3) for x in (qp, kp, vp))
    scores = jnp.einsum("bhsd,bhtd->bhst", qp / temp, kp)
    if attn_mask is not None:
        scores = jnp.where(attn_mask[:, None] == 0, NEG_INF, scores)
    causal = jnp.arange(S)[None, :] > jnp.arange(S)[:, None]
    scores = jnp.where(causal[None, None], NEG_INF, scores)
    attn = jax.nn.softmax(scores, axis=-1)
    out = jnp.einsum("bhst,bhtd->bhsd", attn, vp)
    out = out.transpose(0, 2, 1, 3).reshape(B, S, n_heads * d_v)
    y = out @ params["fc"] + q
    mean = y.mean(-1, keepdims=True)
    var = ((y - mean) ** 2).mean(-1, keepdims=True)
    y = (y - mean) * jax.lax.rsqrt(var + 1e-6) * params["ln_gamma"] + params["ln_beta"]
    return y, attn


if __name__ == "__main__":
    key = jax.random.PRNGKey(0)
    n_heads, d_model, d_k, d_v = 4, 32, 8, 8
    B, S = 2, 8

    kp, kq, kk, kv = jax.random.split(key, 4)
    params = init_mha_params(kp, n_heads, d_model, d_k, d_v)
    q = jax.random.normal(kq, (B, S, d_model), jnp.float32)
    k = jax.random.normal(kk, (B, S, d_model), jnp.float32)
    v = jax.random.normal(kv, (B, S, d_model), jnp.float32)

    # padding mask: batch 0 attends to all 8 keys, batch 1 to the first 6 keys
    lens = jnp.array([8, 6])
    attn_mask = (jnp.arange(S)[None, None, :] < lens[:, None, None]).astype(jnp.float32)
    attn_mask = jnp.broadcast_to(attn_mask, (B, S, S))

    out, attn_w = multi_head_attention(
        params, q, k, v, attn_mask, n_heads=n_heads, d_k=d_k, d_v=d_v)
    jax.block_until_ready((out, attn_w))

    assert out.shape == (B, S, d_model)
    assert attn_w.shape == (B, n_heads, S, S)

    # loose numerical sanity check against a pure-JAX f32 reference
    # (bf16 MXU operands + bf16 intermediates -> ~1e-2 level error expected)
    ref_out, ref_attn = _reference(params, q, k, v, attn_mask, n_heads, d_k, d_v)
    assert float(jnp.max(jnp.abs(out - ref_out))) < 5e-2
    assert float(jnp.max(jnp.abs(attn_w - ref_attn))) < 5e-2
    # returned attention rows sum to ~1 (exact reciprocal used for a_ref)
    assert float(jnp.max(jnp.abs(attn_w.sum(-1) - 1.0))) < 1e-3

    print("KERNEL_OK")
</pallas_src>

<mosaic_0001>
module attributes {stable_mosaic.version = 11 : i64} {
  func.func @_qkv_proj_kernel(%arg0: i32, %arg1: memref<16x32xf32, #tpu.memory_space<vmem>>, %arg2: memref<16x32xf32, #tpu.memory_space<vmem>>, %arg3: memref<16x32xf32, #tpu.memory_space<vmem>>, %arg4: memref<32x32xbf16, #tpu.memory_space<vmem>>, %arg5: memref<32x32xbf16, #tpu.memory_space<vmem>>, %arg6: memref<32x32xbf16, #tpu.memory_space<vmem>>, %arg7: memref<16x32xbf16, #tpu.memory_space<vmem>>, %arg8: memref<16x32xbf16, #tpu.memory_space<vmem>>, %arg9: memref<16x32xbf16, #tpu.memory_space<vmem>>) attributes {dimension_semantics = [#tpu.dimension_semantics<parallel>], iteration_bounds = array<i64: 1>, scalar_prefetch = 0 : i64, scratch_operands = 0 : i64, tpu.core_type = #tpu.core_type<tc>, window_params = [{transform_indices = @transform_0, window_bounds = array<i64: 16, 32>}, {transform_indices = @transform_1, window_bounds = array<i64: 16, 32>}, {transform_indices = @transform_2, window_bounds = array<i64: 16, 32>}, {pipeline_mode = #tpu.pipeline_mode<synchronous>, transform_indices = @transform_3, window_bounds = array<i64: 32, 32>}, {pipeline_mode = #tpu.pipeline_mode<synchronous>, transform_indices = @transform_4, window_bounds = array<i64: 32, 32>}, {pipeline_mode = #tpu.pipeline_mode<synchronous>, transform_indices = @transform_5, window_bounds = array<i64: 32, 32>}, {transform_indices = @transform_6, window_bounds = array<i64: 16, 32>}, {transform_indices = @transform_7, window_bounds = array<i64: 16, 32>}, {transform_indices = @transform_8, window_bounds = array<i64: 16, 32>}]} {
    %c0 = arith.constant 0 : index
    %c0_0 = arith.constant 0 : index
    %0 = vector.load %arg1[%c0, %c0_0] : memref<16x32xf32, #tpu.memory_space<vmem>>, vector<16x32xf32>
    %1 = arith.truncf %0 : vector<16x32xf32> to vector<16x32xbf16>
    %c0_1 = arith.constant 0 : index
    %c0_2 = arith.constant 0 : index
    %2 = vector.load %arg4[%c0_1, %c0_2] : memref<32x32xbf16, #tpu.memory_space<vmem>>, vector<32x32xbf16>
    %cst = arith.constant dense<0.000000e+00> : vector<16x32xf32>
    %3 = tpu.matmul %1, %2, %cst {dimension_numbers = #tpu.dot_dimension_numbers<[1], [0], [0], [1], [0, 0, 1, 1], [], []>} : vector<16x32xbf16>, vector<32x32xbf16>, vector<16x32xf32> -> vector<16x32xf32>
    %4 = arith.truncf %3 : vector<16x32xf32> to vector<16x32xbf16>
    %c0_3 = arith.constant 0 : index
    %c0_4 = arith.constant 0 : index
    %5 = vector.load %arg7[%c0_3, %c0_4] : memref<16x32xbf16, #tpu.memory_space<vmem>>, vector<16x32xbf16>
    tpu.vector_store %arg7[%c0_3, %c0_4], %4 {strides = array<i32>} : memref<16x32xbf16, #tpu.memory_space<vmem>>, vector<16x32xbf16>,
    %c0_5 = arith.constant 0 : index
    %c0_6 = arith.constant 0 : index
    %6 = vector.load %arg2[%c0_5, %c0_6] : memref<16x32xf32, #tpu.memory_space<vmem>>, vector<16x32xf32>
    %7 = arith.truncf %6 : vector<16x32xf32> to vector<16x32xbf16>
    %c0_7 = arith.constant 0 : index
    %c0_8 = arith.constant 0 : index
    %8 = vector.load %arg5[%c0_7, %c0_8] : memref<32x32xbf16, #tpu.memory_space<vmem>>, vector<32x32xbf16>
    %cst_9 = arith.constant dense<0.000000e+00> : vector<16x32xf32>
    %9 = tpu.matmul %7, %8, %cst_9 {dimension_numbers = #tpu.dot_dimension_numbers<[1], [0], [0], [1], [0, 0, 1, 1], [], []>} : vector<16x32xbf16>, vector<32x32xbf16>, vector<16x32xf32> -> vector<16x32xf32>
    %10 = arith.truncf %9 : vector<16x32xf32> to vector<16x32xbf16>
    %c0_10 = arith.constant 0 : index
    %c0_11 = arith.constant 0 : index
    %11 = vector.load %arg8[%c0_10, %c0_11] : memref<16x32xbf16, #tpu.memory_space<vmem>>, vector<16x32xbf16>
    tpu.vector_store %arg8[%c0_10, %c0_11], %10 {strides = array<i32>} : memref<16x32xbf16, #tpu.memory_space<vmem>>, vector<16x32xbf16>,
    %c0_12 = arith.constant 0 : index
    %c0_13 = arith.constant 0 : index
    %12 = vector.load %arg3[%c0_12, %c0_13] : memref<16x32xf32, #tpu.memory_space<vmem>>, vector<16x32xf32>
    %13 = arith.truncf %12 : vector<16x32xf32> to vector<16x32xbf16>
    %c0_14 = arith.constant 0 : index
    %c0_15 = arith.constant 0 : index
    %14 = vector.load %arg6[%c0_14, %c0_15] : memref<32x32xbf16, #tpu.memory_space<vmem>>, vector<32x32xbf16>
    %cst_16 = arith.constant dense<0.000000e+00> : vector<16x32xf32>
    %15 = tpu.matmul %13, %14, %cst_16 {dimension_numbers = #tpu.dot_dimension_numbers<[1], [0], [0], [1], [0, 0, 1, 1], [], []>} : vector<16x32xbf16>, vector<32x32xbf16>, vector<16x32xf32> -> vector<16x32xf32>
    %16 = arith.truncf %15 : vector<16x32xf32> to vector<16x32xbf16>
    %c0_17 = arith.constant 0 : index
    %c0_18 = arith.constant 0 : index
    %17 = vector.load %arg9[%c0_17, %c0_18] : memref<16x32xbf16, #tpu.memory_space<vmem>>, vector<16x32xbf16>
    tpu.vector_store %arg9[%c0_17, %c0_18], %16 {strides = array<i32>} : memref<16x32xbf16, #tpu.memory_space<vmem>>, vector<16x32xbf16>,
    return
  }
  func.func @transform_0(%arg0: i32) -> (i32, i32) {
    %c0_i32 = arith.constant 0 : i32
    %c0_i32_0 = arith.constant 0 : i32
    return %arg0, %c0_i32 : i32, i32
  }
  func.func @transform_1(%arg0: i32) -> (i32, i32) {
    %c0_i32 = arith.constant 0 : i32
    %c0_i32_0 = arith.constant 0 : i32
    return %arg0, %c0_i32 : i32, i32
  }
  func.func @transform_2(%arg0: i32) -> (i32, i32) {
    %c0_i32 = arith.constant 0 : i32
    %c0_i32_0 = arith.constant 0 : i32
    return %arg0, %c0_i32 : i32, i32
  }
  func.func @transform_3(%arg0: i32) -> (i32, i32) {
    %c0_i32 = arith.constant 0 : i32
    %c0_i32_0 = arith.constant 0 : i32
    %c0_i32_1 = arith.constant 0 : i32
    return %c0_i32, %c0_i32_0 : i32, i32
  }
  func.func @transform_4(%arg0: i32) -> (i32, i32) {
    %c0_i32 = arith.constant 0 : i32
    %c0_i32_0 = arith.constant 0 : i32
    %c0_i32_1 = arith.constant 0 : i32
    return %c0_i32, %c0_i32_0 : i32, i32
  }
  func.func @transform_5(%arg0: i32) -> (i32, i32) {
    %c0_i32 = arith.constant 0 : i32
    %c0_i32_0 = arith.constant 0 : i32
    %c0_i32_1 = arith.constant 0 : i32
    return %c0_i32, %c0_i32_0 : i32, i32
  }
  func.func @transform_6(%arg0: i32) -> (i32, i32) {
    %c0_i32 = arith.constant 0 : i32
    %c0_i32_0 = arith.constant 0 : i32
    return %arg0, %c0_i32 : i32, i32
  }
  func.func @transform_7(%arg0: i32) -> (i32, i32) {
    %c0_i32 = arith.constant 0 : i32
    %c0_i32_0 = arith.constant 0 : i32
    return %arg0, %c0_i32 : i32, i32
  }
  func.func @transform_8(%arg0: i32) -> (i32, i32) {
    %c0_i32 = arith.constant 0 : i32
    %c0_i32_0 = arith.constant 0 : i32
    return %arg0, %c0_i32 : i32, i32
  }
}

</mosaic_0001>

<bundles_post_ra>
// kernel: tpu_custom_call.1
= control target key start
LH: loop header
LB: loop body
LE: loop exit
PB: predicated region body
PF: predicated region fallthrough
CT: control target
= control target key end

     0   :  { %14 = vsyncpa [#allocation3], 0  ;;  %s843_s0 = inlined_call_operand.hbm [shape: f32[16,32], index: 0, kind: input, shape index: {}]   ;;  %s844_s1 = inlined_call_operand.hbm [shape: f32[16,32], index: 1, kind: input, shape index: {}]   ;;  %s845_s2 = inlined_call_operand.hbm [shape: f32[16,32], index: 2, kind: input, shape index: {}]   ;;  %s846_s3 = inlined_call_operand.hbm [shape: bf16[32,32], index: 3, kind: input, shape index: {}]   ;;  %s847_s4 = inlined_call_operand.hbm [shape: bf16[32,32], index: 4, kind: input, shape index: {}]   ;;  %s848_s5 = inlined_call_operand.vmem [shape: bf16[32,32], index: 5, kind: input, shape index: {}]   ;;  %s849_s6 = inlined_call_operand.hbm [shape: bf16[16,32], index: 6, kind: output, shape index: {0}]   ;;  %s850_s7 = inlined_call_operand.hbm [shape: bf16[16,32], index: 7, kind: output, shape index: {1}]   ;;  %s851_s8 = inlined_call_operand.hbm [shape: bf16[16,32], index: 8, kind: output, shape index: {2}]  }
   0x1   :  { %15 = vsyncpa [#allocation6], 0 }
   0x2   :  { %16 = vsyncpa [#allocation9], 0 }
   0x3   :  { %17 = vsyncpa [#allocation4], 0 }
   0x4   :  { %18 = vsyncpa [#allocation13], 0  ;;  %s628_s27 = smov [#allocation5]   ;;  %s629_s29 = smov [#allocation8]  }
   0x5   :  { %s36_s28 = sshll.u32 %s628_s27, 4  ;;  %s60_s30 = sshll.u32 %s629_s29, 4  ;;  %s37_s28 = int_to_ptr.vmem [resolvable:$true] %s36_s28  ;;  %s687_s30 = int_to_ptr.vmem [resolvable:$true] %s60_s30 }
   0x6   :  { %s442_s11 = scalar_lea.hbm %s844_s1, 256 }
   0x7   :  { %p443_p0 = scmp.ne.s32.totalorder %s844_s1, %s442_s11  ;;  %p446_p1 = scmp.lt.u32.totalorder %s442_s11, %s844_s1 }
   0x9   :  { %p448_p2 = pnand %p446_p1, %p443_p0 }
   0xb   :  { %451 = shalt.err (!%p448_p2)
}
   0xc   :  { %s452_s16 = scalar_lea.vmem %s37_s28, 256  ;;  %p457_p4 = scmp.lt.s32.totalorder %s37_s28, %s37_s28 }
   0xd   :  { %p453_p3 = scmp.ne.s32.totalorder %s37_s28, %s452_s16  ;;  %p458_p5 = scmp.lt.s32.totalorder %s452_s16, %s452_s16 }
   0xf   :  { %p459_p6 = por %p458_p5, %p457_p4 }
  0x11   :  { %p460_p7 = pnand %p459_p6, %p453_p3 }
  0x13   :  { %463 = shalt.err (!%p460_p7)
}
  0x14   :  { %s630_s17 = smov 128   ;;  %s631_s18 = smov 8  }
  0x15   :  { %42 = dma.hbm_to_vmem [thread:$0]  %s844_s1, 256, %s37_s28, [#allocation6], %s630_s17, %s630_s17, %s631_s18  }
  0x16   :  { %s464_s23 = scalar_lea.hbm %s846_s3, 256 }
  0x17   :  { %p465_p8 = scmp.ne.s32.totalorder %s846_s3, %s464_s23  ;;  %p468_p9 = scmp.lt.u32.totalorder %s464_s23, %s846_s3 }
  0x19   :  { %p470_p10 = pnand %p468_p9, %p465_p8 }
  0x1b   :  { %473 = shalt.err (!%p470_p10)
}
  0x1c   :  { %s474_s29 = scalar_lea.vmem %s687_s30, 256  ;;  %p479_p12 = scmp.lt.s32.totalorder %s687_s30, %s687_s30 }
  0x1d   :  { %p475_p11 = scmp.ne.s32.totalorder %s687_s30, %s474_s29  ;;  %p480_p13 = scmp.lt.s32.totalorder %s474_s29, %s474_s29 }
  0x1f   :  { %p481_p0 = por %p480_p13, %p479_p12 }
  0x21   :  { %p482_p1 = pnand %p481_p0, %p475_p11 }
  0x23   :  { %485 = shalt.err (!%p482_p1)
}
  0x24   :  { %s632_s1 = smov 64   ;;  %s633_s28 = smov 4  }
  0x25   :  { %66 = dma.hbm_to_vmem [thread:$0]  %s846_s3, 256, %s687_s30, [#allocation9], %s632_s1, %s632_s1, %s633_s28  }
  0x26   :  { %s634_s11 = smov [#allocation2]   ;;  %s635_s13 = smov [#allocation7]  }
  0x27   :  { %s24_s12 = sshll.u32 %s634_s11, 4  ;;  %s48_s14 = sshll.u32 %s635_s13, 4  ;;  %s25_s12 = int_to_ptr.vmem [resolvable:$true] %s24_s12  ;;  %s724_s14 = int_to_ptr.vmem [resolvable:$true] %s48_s14 }
  0x28   :  { %s486_s19 = scalar_lea.hbm %s843_s0, 256 }
  0x29   :  { %p487_p2 = scmp.ne.s32.totalorder %s843_s0, %s486_s19  ;;  %p490_p3 = scmp.lt.u32.totalorder %s486_s19, %s843_s0 }
  0x2b   :  { %p492_p4 = pnand %p490_p3, %p487_p2 }
  0x2d   :  { %495 = shalt.err (!%p492_p4)
}
  0x2e   :  { %s496_s3 = scalar_lea.vmem %s25_s12, 256  ;;  %p501_p6 = scmp.lt.s32.totalorder %s25_s12, %s25_s12 }
  0x2f   :  { %p497_p5 = scmp.ne.s32.totalorder %s25_s12, %s496_s3  ;;  %p502_p7 = scmp.lt.s32.totalorder %s496_s3, %s496_s3 }
  0x31   :  { %p503_p8 = por %p502_p7, %p501_p6 }
  0x33   :  { %p504_p9 = pnand %p503_p8, %p497_p5 }
  0x35   :  { %507 = shalt.err (!%p504_p9)
}
  0x36   :  { %30 = dma.hbm_to_vmem [thread:$0]  %s843_s0, 256, %s25_s12, [#allocation3], %s630_s17, %s630_s17, %s631_s18  }
  0x37   :  { %s508_s27 = scalar_lea.hbm %s845_s2, 256 }
  0x38   :  { %p509_p10 = scmp.ne.s32.totalorder %s845_s2, %s508_s27  ;;  %p512_p11 = scmp.lt.u32.totalorder %s508_s27, %s845_s2 }
  0x3a   :  { %p514_p12 = pnand %p512_p11, %p509_p10 }
  0x3c   :  { %517 = shalt.err (!%p514_p12)
}
  0x3d   :  { %s518_s13 = scalar_lea.vmem %s724_s14, 256  ;;  %p523_p0 = scmp.lt.s32.totalorder %s724_s14, %s724_s14 }
  0x3e   :  { %p519_p13 = scmp.ne.s32.totalorder %s724_s14, %s518_s13  ;;  %p524_p1 = scmp.lt.s32.totalorder %s518_s13, %s518_s13 }
  0x40   :  { %p525_p2 = por %p524_p1, %p523_p0 }
  0x42   :  { %p526_p3 = pnand %p525_p2, %p519_p13 }
  0x44   :  { %529 = shalt.err (!%p526_p3)
}
  0x45   :  { %54 = dma.hbm_to_vmem [thread:$0]  %s845_s2, 256, %s724_s14, [#allocation6], %s630_s17, %s630_s17, %s631_s18  }
  0x46   :  { %s636_s15 = smov [#allocation10]   ;;  %s530_s21 = scalar_lea.hbm %s847_s4, 256 }
  0x47   :  { %s72_s16 = sshll.u32 %s636_s15, 4  ;;  %p531_p4 = scmp.ne.s32.totalorder %s847_s4, %s530_s21  ;;  %s73_s16 = int_to_ptr.vmem [resolvable:$true] %s72_s16 }
  0x48   :  { %p534_p5 = scmp.lt.u32.totalorder %s530_s21, %s847_s4 }
  0x4a   :  { %p536_p6 = pnand %p534_p5, %p531_p4 }
  0x4c   :  { %539 = shalt.err (!%p536_p6)
}
  0x4d   :  { %s540_s24 = scalar_lea.vmem %s73_s16, 256  ;;  %p545_p8 = scmp.lt.s32.totalorder %s73_s16, %s73_s16 }
  0x4e   :  { %p541_p7 = scmp.ne.s32.totalorder %s73_s16, %s540_s24  ;;  %p546_p9 = scmp.lt.s32.totalorder %s540_s24, %s540_s24 }
  0x50   :  { %p547_p10 = por %p546_p9, %p545_p8 }
  0x52   :  { %p548_p11 = pnand %p547_p10, %p541_p7 }
  0x54   :  { %551 = shalt.err (!%p548_p11)
}
  0x55   :  { %78 = dma.hbm_to_vmem [thread:$0]  %s847_s4, 256, %s73_s16, [#allocation9], %s632_s1, %s632_s1, %s633_s28  }
  0x56   :  { %618 = dma.done.wait [#allocation3], 256  }
  0x57   :  { %619 = vsyncadd [#allocation3], 4294967040 }
  0x58   :  { %620 = dma.done.wait [#allocation6], 512  }
  0x59   :  { %621 = vsyncadd [#allocation6], 4294966784 }
  0x5a   :  { %622 = dma.done.wait [#allocation9], 512  }
  0x5b   :  { %623 = vsyncadd [#allocation9], 4294966784  ;;  %v637_v0 = vmov 0.0   ;;  %vm638_vm0 = vmmov 0   ;;  %v436_v1 = vld [vmem:[#allocation8] sm:$0xff]   ;;  %v437_v2 = vld [vmem:[#allocation8 + $0x8] sm:$0xff]  }
  0x5c   :  { %398 = vmatprep.subr.bf16.mxu0 %v637_v0  ;;  %406 = vmatprep.subr.bf16.mxu1 %v637_v0  ;;  %v438_v3 = vld [vmem:[#allocation10] sm:$0xff]   ;;  %v98_v5 = vld [vmem:[#allocation2 + $0x8] sm:$0xff]  ;;  %v172_v9 = vld [vmem:[#allocation5] sm:$0xff]  ;;  %vm116_vm1 = vcmask 261120   ;;  %vm169_vm2 = vcmask 257024   ;;  %s639_s26 = smov [#allocation11]  }
  0x5d   :  { %402 = vmatprep.mubr.msk.bf16.mxu0 %vm638_vm0, %v637_v0  ;;  %410 = vmatprep.mubr.msk.bf16.mxu1 %vm638_vm0, %v637_v0  ;;  %v97_v4 = vld [vmem:[#allocation2] sm:$0xff]  ;;  %v440_v8 = vld [vmem:[#allocation10 + $0x8] sm:$0xff]   ;;  %v173_v10 = vld [vmem:[#allocation5 + $0x8] sm:$0xff]  ;;  %s323_s27 = sshll.u32 %s639_s26, 4  ;;  %s640_s29 = smov [#allocation12]   ;;  %s324_s27 = int_to_ptr.vmem [resolvable:$true] %s323_s27 }
  0x5e   :  { %399 = vmatpush3.bf16.msra.mxu0 %v436_v1  ;;  %407 = vmatpush3.bf16.msra.mxu1 %v438_v3  ;;  %v439_v6 = vld [vmem:[%s848_s5] sm:$0xff]   ;;  %v99_v7 = vpack.c.bf16 %v98_v5, %v97_v4  ;;  %v174_v11 = vpack.c.bf16 %v173_v10, %v172_v9  ;;  %v441_v12 = vld [vmem:[%s848_s5 + $0x8] sm:$0xff]   ;;  %s335_s9 = sshll.u32 %s640_s29, 4  ;;  %s552_s5 = scalar_lea.vmem %s324_s27, 128  ;;  %s788_s9 = int_to_ptr.vmem [resolvable:$true] %s335_s9 }
  0x5f   :  { %400 = vmatprep.subr.bf16.mxu0 %v637_v0  ;;  %408 = vmatprep.subr.bf16.mxu1 %v637_v0  ;;  %v245_v13 = vld [vmem:[#allocation7] sm:$0xff]  ;;  %v246_v14 = vld [vmem:[#allocation7 + $0x8] sm:$0xff]  ;;  %p553_p12 = scmp.ne.s32.totalorder %s324_s27, %s552_s5  ;;  %p557_p13 = scmp.lt.s32.totalorder %s324_s27, %s324_s27 }
  0x60   :  { %v247_v15 = vpack.c.bf16 %v246_v14, %v245_v13  ;;  %p558_p0 = scmp.lt.s32.totalorder %s552_s5, %s552_s5 }
  0x62   :  { %401 = vmatpush3.bf16.msra.mxu0 %v437_v2  ;;  %409 = vmatpush3.bf16.msra.mxu1 %v440_v8  ;;  %p559_p1 = por %p558_p0, %p557_p13 }
  0x63   :  { %414 = vmatprep.subr.bf16.mxu0 %v637_v0 }
  0x64   :  { %p560_p2 = pnand %p559_p1, %p553_p12 }
  0x65   :  { %403 = vmatmul.mubr.msk.bf16.vlgmr.msra.gmra.mrb[0].mxu0 %vm116_vm1, %v99_v7  ;;  %411 = vmatmul.mubr.msk.bf16.vlgmr.msra.gmra.mrb[0].mxu1 %vm116_vm1, %v174_v11 }
  0x66   :  { %415 = vmatpush3.bf16.msra.mxu0 %v439_v6  ;;  %418 = vmatprep.mubr.msk.bf16.mxu0 %vm638_vm0, %v637_v0 }
  0x67   :  { %416 = vmatprep.subr.bf16.mxu0 %v637_v0 }
  0x6a   :  { %417 = vmatpush3.bf16.msra.mxu0 %v441_v12 }
  0x6d   :  { %419 = vmatmul.mubr.msk.bf16.vlgmr.msra.gmra.mrb[4].mxu0 %vm116_vm1, %v247_v15 }
 0x138   :  { %v154_v16 = vpop.f32.mrb[0].mxu0  ;;  %v228_v20 = vpop.f32.mrb[0].mxu1 }
 0x139   :  { %v383_v17 = vpack.c.bf16 %v154_v16, %v154_v16  ;;  %v404_v18 = vpop.f32.mrb[1].mxu0  ;;  %v385_v23 = vpack.c.bf16 %v228_v20, %v228_v20  ;;  %v412_v24 = vpop.f32.mrb[1].mxu1 }
 0x13a   :  { %v157_v19 = vpop.f32.mrb[2].mxu0  ;;  %v231_v25 = vpop.f32.mrb[2].mxu1 }
 0x13b   :  { %v384_v21 = vpack.c.bf16 %v157_v19, %v157_v19  ;;  %v405_v22 = vpop.f32.mrb[3].mxu0  ;;  %170 = vst.msk [vmem:[#allocation11] sm:$0xf] %vm169_vm2, %v383_v17  ;;  %v386_v26 = vpack.c.bf16 %v231_v25, %v231_v25  ;;  %v413_v27 = vpop.f32.mrb[3].mxu1  ;;  %243 = vst.msk [vmem:[#allocation12] sm:$0xf] %vm169_vm2, %v385_v23 }
 0x13d   :  { %171 = vst.msk [vmem:[#allocation11 + $0x4] sm:$0xf] %vm169_vm2, %v384_v21 }
 0x13e   :  { %563 = shalt.err (!%p560_p2)
}
 0x13f   :  { %s564_s13 = scalar_lea.hbm %s849_s6, 128 }
 0x140   :  { %p565_p3 = scmp.ne.s32.totalorder %s849_s6, %s564_s13  ;;  %p568_p4 = scmp.lt.u32.totalorder %s564_s13, %s849_s6 }
 0x142   :  { %p570_p5 = pnand %p568_p4, %p565_p3 }
 0x144   :  { %573 = shalt.err (!%p570_p5)
}
 0x145   :  { %329 = dma.vmem_to_hbm [thread:$0]  %s324_s27, 128, %s849_s6, [#allocation4], %s632_s1, %s632_s1, %s633_s28   ;;  %244 = vst.msk [vmem:[#allocation12 + $0x4] sm:$0xf] %vm169_vm2, %v386_v26  ;;  %v301_v28 = vpop.f32.mrb[4].mxu0 }
 0x146   :  { %s641_s21 = smov [#allocation14]   ;;  %s574_s23 = scalar_lea.vmem %s788_s9, 128 }
 0x147   :  { %s347_s22 = sshll.u32 %s641_s21, 4  ;;  %p575_p6 = scmp.ne.s32.totalorder %s788_s9, %s574_s23  ;;  %s348_s22 = int_to_ptr.vmem [resolvable:$true] %s347_s22 }
 0x148   :  { %p579_p7 = scmp.lt.s32.totalorder %s788_s9, %s788_s9  ;;  %p580_p8 = scmp.lt.s32.totalorder %s574_s23, %s574_s23 }
 0x14a   :  { %p581_p9 = por %p580_p8, %p579_p7 }
 0x14c   :  { %p582_p10 = pnand %p581_p9, %p575_p6 }
 0x14e   :  { %585 = shalt.err (!%p582_p10)
}
 0x14f   :  { %s586_s24 = scalar_lea.hbm %s850_s7, 128 }
 0x150   :  { %p587_p11 = scmp.ne.s32.totalorder %s850_s7, %s586_s24  ;;  %p590_p12 = scmp.lt.u32.totalorder %s586_s24, %s850_s7 }
 0x152   :  { %p592_p13 = pnand %p590_p12, %p587_p11 }
 0x154   :  { %595 = shalt.err (!%p592_p13)
}
 0x155   :  { %341 = dma.vmem_to_hbm [thread:$0]  %s788_s9, 128, %s850_s7, [#allocation13], %s632_s1, %s632_s1, %s633_s28   ;;  %v387_v29 = vpack.c.bf16 %v301_v28, %v301_v28  ;;  %v420_v30 = vpop.f32.mrb[5].mxu0 }
 0x156   :  { %v304_v31 = vpop.f32.mrb[6].mxu0  ;;  %s596_s25 = scalar_lea.vmem %s348_s22, 128  ;;  %p601_p1 = scmp.lt.s32.totalorder %s348_s22, %s348_s22 }
 0x157   :  { %316 = vst.msk [vmem:[#allocation14] sm:$0xf] %vm169_vm2, %v387_v29  ;;  %v388_v32 = vpack.c.bf16 %v304_v31, %v304_v31  ;;  %v421_v33 = vpop.f32.mrb[7].mxu0  ;;  %p597_p0 = scmp.ne.s32.totalorder %s348_s22, %s596_s25  ;;  %p602_p2 = scmp.lt.s32.totalorder %s596_s25, %s596_s25 }
 0x159   :  { %317 = vst.msk [vmem:[#allocation14 + $0x4] sm:$0xf] %vm169_vm2, %v388_v32  ;;  %p603_p3 = por %p602_p2, %p601_p1 }
 0x15b   :  { %p604_p4 = pnand %p603_p3, %p597_p0 }
 0x15d   :  { %607 = shalt.err (!%p604_p4)
}
 0x15e   :  { %s608_s7 = scalar_lea.hbm %s851_s8, 128 }
 0x15f   :  { %p609_p5 = scmp.ne.s32.totalorder %s851_s8, %s608_s7  ;;  %p612_p6 = scmp.lt.u32.totalorder %s608_s7, %s851_s8 }
 0x161   :  { %p614_p7 = pnand %p612_p6, %p609_p5 }
 0x163   :  { %617 = shalt.err (!%p614_p7)
}
 0x164   :  { %353 = dma.vmem_to_hbm [thread:$0]  %s348_s22, 128, %s851_s8, [#allocation13], %s632_s1, %s632_s1, %s633_s28  }
 0x165   :  { %624 = dma.done.wait [#allocation4], 128  }
 0x166   :  { %625 = vsyncadd [#allocation4], 4294967168 }
 0x167   :  { %626 = dma.done.wait [#allocation13], 256  }
 0x168   :  { %627 = vsyncadd [#allocation13], 4294967040 }
 0x169   :  { %363 = vsyncpa [#allocation3], 1 }
 0x16a   :  { %364 = vsyncpa [#allocation6], 1 }
 0x16b   :  { %365 = vsyncpa [#allocation9], 1 }
 0x16c   :  { %366 = vsyncpa [#allocation4], 1 }
 0x16d   :  { %367 = vsyncpa [#allocation13], 1 }

</bundles_post_ra>
